<compile_context>
chip_gen: v7x
topology: tpu7x:2x2x1
jax: 0.10.0
libtpu: 0.0.40
codegen_flags: <defaults>
</compile_context>

<pallas_src>
import functools

import jax
import jax.numpy as jnp
from jax.experimental import pallas as pl
from jax.experimental.pallas import tpu as pltpu


def _sigmoid_mul_kernel(g_ref, x_ref, o_ref, *, tile_c):
    # g_ref: (C_pad, 1) gate logits, VMEM-resident (constant block index).
    # x_ref / o_ref: (tile_c, HW) activation / output tile.
    start = pl.multiple_of(pl.program_id(0) * tile_c, tile_c)
    g = g_ref[pl.ds(start, tile_c), :]                          # (tile_c, 1)
    # Sigmoid in f32 on just tile_c values (EUP, effectively free), then cast
    # the gate -- not the activation tile -- so the multiply stays in the
    # input dtype (no full-tile f32 upcast).
    g = jax.nn.sigmoid(g.astype(jnp.float32)).astype(o_ref.dtype)
    o_ref[...] = g * x_ref[...]


def _round_up(x, m):
    return (x + m - 1) // m * m


def _pick_tile_c(c, hw, itemsize, target_steps=4):
    """Channel tile: ~target_steps grid steps, sublane/packing aligned, <=4 MiB block."""
    sublane = max(8, 32 // itemsize)          # 8 (f32), 16 (bf16), 32 (int8/fp8)
    tile = _round_up(max(pl.cdiv(c, target_steps), 1), sublane)
    # Cap block size for very large spatial extents (irrelevant at 14x14).
    max_block_bytes = 4 << 20
    max_tile = max(sublane,
                   (max_block_bytes // max(hw * itemsize, 1)) // sublane * sublane)
    tile = min(tile, max_tile)
    tile = min(tile, _round_up(c, sublane))   # never exceed (padded) C
    return tile


def sigmoid_mul(x227, x223, *, tile_c=None, target_steps=4):
    """x227: (N, C, 1, 1) gate logits, x223: (N, C, H, W) -> sigmoid(x227) * x223."""
    assert x227.ndim == 4 and x223.ndim == 4
    n, c, h, w = x223.shape
    assert x227.shape == (n, c, 1, 1)

    hw = h * w
    cn = n * c                                 # fold batch into the channel axis
    g2d = x227.reshape(cn, 1)                  # free reshapes (contiguous NCHW)
    x2d = x223.reshape(cn, hw)

    itemsize = jnp.dtype(x223.dtype).itemsize
    sublane = max(8, 32 // itemsize)
    if tile_c is None:
        tile_c = _pick_tile_c(cn, hw, itemsize, target_steps)
    assert tile_c == cn or tile_c % sublane == 0, (
        f"tile_c must be a multiple of {sublane} for dtype {x223.dtype} (or == N*C)")

    grid_c = pl.cdiv(cn, tile_c)
    c_pad = grid_c * tile_c
    if c_pad != cn:
        # Pad the (tiny) gate so the in-kernel pl.ds slice of the resident block
        # is always in bounds on the ragged last step (VMEM has no OOB check).
        # Padded logits give sigmoid(0)=0.5 on rows that are never written back.
        g2d = jnp.pad(g2d, ((0, c_pad - cn), (0, 0)))

    # NOTE: HW = 196 is kept as the (full) lane dimension; padding it to 128*k
    # would cost an extra HBM pass on a purely bandwidth-bound kernel.
    out2d = pl.pallas_call(
        functools.partial(_sigmoid_mul_kernel, tile_c=tile_c),
        out_shape=jax.ShapeDtypeStruct((cn, hw), x223.dtype),
        grid=(grid_c,),
        in_specs=[
            # Whole gate resident in VMEM (constant block index -> DMA'd once),
            # sliced in-kernel with pl.ds.
            pl.BlockSpec((c_pad, 1), lambda i: (0, 0)),
            pl.BlockSpec((tile_c, hw), lambda i: (i, 0)),
        ],
        out_specs=pl.BlockSpec((tile_c, hw), lambda i: (i, 0)),
        compiler_params=pltpu.CompilerParams(
            dimension_semantics=("parallel",),   # even step count -> v7x 2-TC split
        ),
    )(g2d, x2d)

    return out2d.reshape(n, c, h, w)


if __name__ == "__main__":
    key = jax.random.PRNGKey(0)

    def _run_and_check(idx, c, h, w, dtype):
        k1, k2 = jax.random.split(jax.random.fold_in(key, idx))
        x223 = jax.random.normal(k1, (1, c, h, w), dtype=jnp.float32).astype(dtype)
        x227 = jax.random.normal(k2, (1, c, 1, 1), dtype=jnp.float32).astype(dtype)

        out = jax.block_until_ready(sigmoid_mul(x227, x223))

        ref = jax.nn.sigmoid(x227.astype(jnp.float32)).astype(dtype) * x223
        assert out.shape == x223.shape and out.dtype == x223.dtype
        tol = 1e-6 if dtype == jnp.float32 else 2e-2
        assert jnp.allclose(out.astype(jnp.float32), ref.astype(jnp.float32),
                            atol=tol, rtol=tol), f"mismatch vs reference (case {idx})"

    # Small shape consistent with the module's (1, C, H, W) * (1, C, 1, 1) pattern.
    _run_and_check(0, 32, 14, 14, jnp.float32)
    # The module's actual shape: C=2904, 14x14 -> tile_c=728, 4 grid steps
    # (ragged last block of 720 rows).
    _run_and_check(1, 2904, 14, 14, jnp.float32)
    # bf16 exercises the packed-sublane tile (736) + ragged last block path.
    _run_and_check(2, 2904, 14, 14, jnp.bfloat16)

    print("KERNEL_OK")
</pallas_src>

<mosaic_0001>
module attributes {stable_mosaic.version = 11 : i64} {
  func.func @_sigmoid_mul_kernel(%arg0: i32, %arg1: memref<32x1xf32, #tpu.memory_space<vmem>>, %arg2: memref<8x196xf32, #tpu.memory_space<vmem>>, %arg3: memref<8x196xf32, #tpu.memory_space<vmem>>) attributes {dimension_semantics = [#tpu.dimension_semantics<parallel>], iteration_bounds = array<i64: 4>, scalar_prefetch = 0 : i64, scratch_operands = 0 : i64, tpu.core_type = #tpu.core_type<tc>, window_params = [{pipeline_mode = #tpu.pipeline_mode<synchronous>, transform_indices = @transform_0, window_bounds = array<i64: 32, 1>}, {transform_indices = @transform_1, window_bounds = array<i64: 8, 196>}, {transform_indices = @transform_2, window_bounds = array<i64: 8, 196>}]} {
    %c8_i32 = arith.constant 8 : i32
    %0 = arith.muli %arg0, %c8_i32 : i32
    %1 = tpu.assume_multiple %0, 8 : i32
    %2 = arith.index_cast %1 : i32 to index
    %c0 = arith.constant 0 : index
    %3 = vector.load %arg1[%2, %c0] : memref<32x1xf32, #tpu.memory_space<vmem>>, vector<8x1xf32>
    %4 = arith.negf %3 : vector<8x1xf32>
    %5 = math.exp %4 : vector<8x1xf32>
    %cst = arith.constant 1.000000e+00 : f32
    %6 = vector.broadcast %cst : f32 to vector<8x1xf32>
    %7 = arith.addf %6, %5 : vector<8x1xf32>
    %8 = arith.divf %6, %7 : vector<8x1xf32>
    %c0_0 = arith.constant 0 : index
    %c0_1 = arith.constant 0 : index
    %9 = vector.load %arg2[%c0_0, %c0_1] : memref<8x196xf32, #tpu.memory_space<vmem>>, vector<8x196xf32>
    %10 = vector.broadcast %8 : vector<8x1xf32> to vector<8x196xf32>
    %11 = arith.mulf %10, %9 : vector<8x196xf32>
    %c0_2 = arith.constant 0 : index
    %c0_3 = arith.constant 0 : index
    %12 = vector.load %arg3[%c0_2, %c0_3] : memref<8x196xf32, #tpu.memory_space<vmem>>, vector<8x196xf32>
    tpu.vector_store %arg3[%c0_2, %c0_3], %11 {strides = array<i32>} : memref<8x196xf32, #tpu.memory_space<vmem>>, vector<8x196xf32>,
    return
  }
  func.func @transform_0(%arg0: i32) -> (i32, i32) {
    %c0_i32 = arith.constant 0 : i32
    %c0_i32_0 = arith.constant 0 : i32
    %c0_i32_1 = arith.constant 0 : i32
    return %c0_i32, %c0_i32_0 : i32, i32
  }
  func.func @transform_1(%arg0: i32) -> (i32, i32) {
    %c0_i32 = arith.constant 0 : i32
    %c0_i32_0 = arith.constant 0 : i32
    return %arg0, %c0_i32 : i32, i32
  }
  func.func @transform_2(%arg0: i32) -> (i32, i32) {
    %c0_i32 = arith.constant 0 : i32
    %c0_i32_0 = arith.constant 0 : i32
    return %arg0, %c0_i32 : i32, i32
  }
}

</mosaic_0001>

<bundles_post_ra>
// kernel: tpu_custom_call.1
= control target key start
LH: loop header
LB: loop body
LE: loop exit
PB: predicated region body
PF: predicated region fallthrough
CT: control target
= control target key end

     0   :  { %7 = vsyncpa [#allocation3], 0  ;;  %s617_s0 = inlined_call_operand.vmem [shape: f32[32,1], index: 0, kind: input, shape index: {}]   ;;  %s618_s1 = inlined_call_operand.hbm [shape: f32[32,196], index: 1, kind: input, shape index: {}]   ;;  %s619_s2 = inlined_call_operand.hbm [shape: f32[32,196], index: 2, kind: output, shape index: {}]  }
   0x1   :  { %9 = vsyncpa [#allocation3 + $0x1], 0 }
   0x2   :  { %10 = vsyncpa [#allocation4], 0 }
   0x3   :  { %12 = vsyncpa [#allocation4 + $0x1], 0  ;;  %s454_s9 = smov 0   ;;  %s456_s10 = smov 0  }
   0x4   :  { %s458_s11 = smov 0   ;;  %s460_s12 = smov 0  }
   0x5 LB: > { %s475_s13 = sadd.s32 4294967295, %s434_s12   ;;  %s268_s14 = sadd.s32 4294967294, %s434_s12   ;;  %s434_s12 = sphi %s460_s12, %s633_s12   ;;  %s430_s11 = sphi %s458_s11, %s632_s11   ;;  %s426_s10 = sphi %s456_s10, %s631_s10   ;;  %s422_s9 = sphi %s454_s9, %s630_s9  }
   0x6   : > { %s479_s15 = sadd.s32 1, %s434_s12   ;;  %s46_s16 = sadd.s32 1, %s430_s11 }
   0x7   : > { %s43_s17 = ssub.s32 %s434_s12, %s479_s15  ;;  %p53_p0 = scmp.ne.s32.totalorder %s430_s11, %s426_s10 }
   0x8   : > { %p44_p1 = scmp.eq.s32.totalorder %s43_s17, 0  ;;  %p54_p2 = scmp.eq.s32.totalorder %s434_s12, 0 }
   0x9   : > { %p59_p3 = scmp.ne.s32.totalorder %s426_s10, %s422_s9  ;;  %p60_p4 = scmp.eq.s32.totalorder %s475_s13, 0 }
   0xa   : > { %s491_s18 = scalar_select %p44_p1, %s430_s11, %s46_s16  }
   0xb   : > { %p493_p5 = por %p54_p2, %p53_p0  ;;  %p497_p6 = por %p60_p4, %p59_p3 }
   0xc   : > { %p83_p7 = scmp.eq.s32.totalorder %s475_s13, 3  ;;  %p89_p8 = scmp.eq.s32.totalorder %s268_s14, 3 }
   0xd   : > { %p298_p9 = scmp.lt.s32.totalorder %s434_s12, 4  ;;  %s112_s23 = sand.u32 1, %s430_s11  }
   0xe   : > { %p503_p10 = por %p83_p7, %p53_p0  ;;  %p507_p11 = por %p89_p8, %p59_p3 }
   0xf   : > { %s284_s24 = sshll.u32 %s434_s12, 8  ;;  %s271_s25 = sshll.u32 %s112_s23, 4 }
  0x10   : > { %s623_s21 = scalar_select %p503_p10, 1, 0 }
  0x11   : > { %s624_s22 = scalar_select %p507_p11, 1, 0 }
  0x12   : > { %s516_s28 = scalar_lea.hbm %s618_s1, %s284_s24  ;;  %s116_s29 = scalar_lea.vmem [#allocation2], %s271_s25 }
  0x13   : > { %s124_s30 = sshll.u32 %s116_s29, 4  ;;  %p520_p12 = pnand %p298_p9, %p493_p5  ;;  %s524_s30 = int_to_ptr.vmem [resolvable:$true] %s124_s30 }
  0x14   : > { %s113_s4 = scalar_lea.sflag [#allocation3], %s112_s23  ;;  %s338_s5 = scalar_lea.hbm %s516_s28, 256 }
  0x15   : > { %p339_p1 = scmp.ne.s32.totalorder %s516_s28, %s338_s5  ;;  %p340_p2 = pneg %p520_p12 }
  0x16   : > { %s343_s8 = scalar_lea.hbm %s618_s1, 1024  ;;  %p344_p5 = scmp.lt.u32.totalorder %s516_s28, %s618_s1 }
  0x17   : > { %p341_p3 = pnand %p340_p2, %p339_p1  ;;  %p345_p7 = scmp.lt.u32.totalorder %s343_s8, %s338_s5 }
  0x18   : > { %p347_p9 = scmp.lt.u32.totalorder %s338_s5, %s516_s28 }
  0x19   : > { %p342_p4 = pneg %p341_p3  ;;  %p346_p8 = por %p345_p7, %p344_p5 }
  0x1b   : > { %p348_p13 = por %p347_p9, %p346_p8 }
  0x1d   : > { %p349_p0 = pnand %p348_p13, %p342_p4 }
  0x1f   : > { %352 = shalt.err (!%p349_p0)
}
  0x20   : > { %s353_s17 = scalar_lea.vmem %s524_s30, 256  ;;  %s436_s19 = smov [#allocation2]  }
  0x21   : > { %p354_p1 = scmp.ne.s32.totalorder %s524_s30, %s353_s17  ;;  %s358_s23 = sshll.u32 %s436_s19, 4  ;;  %s359_s23 = int_to_ptr.vmem [resolvable:$false] %s358_s23 }
  0x22   : > { %s360_s24 = scalar_lea.vmem %s359_s23, 512  ;;  %p361_p10 = scmp.lt.s32.totalorder %s524_s30, %s359_s23 }
  0x23   : > { %p356_p3 = pnand %p354_p1, %p340_p2  ;;  %p362_p5 = scmp.lt.s32.totalorder %s360_s24, %s353_s17 }
  0x25   : > { %p357_p11 = pneg %p356_p3  ;;  %p363_p7 = por %p362_p5, %p361_p10 }
  0x27   : > { %p364_p8 = pnand %p363_p7, %p357_p11 }
  0x29   : > { %367 = shalt.err (!%p364_p8)
}
  0x2a   : > { %293 = dma.hbm_to_vmem [thread:$0]  (!%p520_p12), %s516_s28, 256, %s524_s30, %s113_s4  }
  0x2b   : > { %p626_p13 = scmp.lt.s32.totalorder %s434_s12, 5  ;;  %p627_p0 = scmp.ge.s32.totalorder %s434_s12, 1 }
  0x2d   : > { %p130_p2 = pnand %p627_p0, %p626_p13 }
  0x2e   : > { %s558_s25 = sand.u32 (!%p130_p2), 1, %s426_s10  }
  0x2f   : > { %133 = sbr.rel (%p130_p2) target bundleno = 228 (0xe4), region = 28  ;;  %s275_s26 = sshll.u32 (!%p130_p2), %s558_s25, 4 }
  0x30   : > { %s136_s27 = scalar_lea.sflag (!%p130_p2), [#allocation3], %s558_s25  ;;  %s139_s29 = scalar_lea.vmem (!%p130_p2), [#allocation2], %s275_s26 }
  0x36   : > { %413 = dma.done.wait (%p497_p6), %s136_s27, 256  }
  0x37   : > { %415 = vsyncadd (%p497_p6), %s136_s27, 4294967040  ;;  %v437_v0 = vmov 0   ;;  %s277_s28 = sshll.u32 %s475_s13, 3  ;;  %v169_v6 = vld [vmem:[%s139_s29] sm:$0xff]  ;;  %v170_v7 = vld [vmem:[%s139_s29 + $0x8] sm:$0xff]  ;;  %s285_s20 = sshll.u32 %s475_s13, 8 }
  0x38   : > { %333 = vset.pattern.permute.xlu0 %v437_v0  ;;  %s161_s4 = scalar_lea.vmem %s617_s0, %s277_s28  ;;  %s159_s5 = scalar_lea.vmem [#allocation5], %s275_s26  ;;  %vm179_vm0 = vcmask 556032  }
  0x39   : > { %v162_v1 = vld [vmem:[%s161_s4] sm:$0xff]  ;;  %s196_s6 = sshll.u32 %s159_s5, 4  ;;  %s574_s14 = scalar_lea.hbm %s619_s2, %s285_s20  ;;  %s576_s6 = int_to_ptr.vmem [resolvable:$true] %s196_s6 }
  0x3a   : > { %v278_v2 = vmul.f32 -1.442695, %v162_v1  ;;  %s182_s16 = scalar_lea.sflag [#allocation4], %s558_s25  ;;  %s368_s13 = scalar_lea.vmem %s576_s6, 256 }
  0x3b   : > { %p369_p6 = scmp.ne.s32.totalorder %s576_s6, %s368_s13  ;;  %p628_p10 = scmp.ne.s32.totalorder %s623_s21, 0 }
  0x3c   : > { %334 = vpow2.f32 %v278_v2  ;;  %s438_s17 = smov [#allocation5]  }
  0x3d   : > { %p370_p11 = pnand %p369_p6, %p628_p10  ;;  %s372_s19 = sshll.u32 %s438_s17, 4  ;;  %s373_s19 = int_to_ptr.vmem [resolvable:$false] %s372_s19 }
  0x3e   : > { %s374_s23 = scalar_lea.vmem %s373_s19, 512  ;;  %p375_p4 = scmp.lt.s32.totalorder %s576_s6, %s373_s19 }
  0x3f   : > { %p371_p12 = pneg %p370_p11  ;;  %p376_p9 = scmp.lt.s32.totalorder %s374_s23, %s368_s13 }
  0x41   : > { %p377_p1 = por %p376_p9, %p375_p4 }
  0x43   : > { %p378_p3 = pnand %p377_p1, %p371_p12 }
  0x46   : > { %v335_v3 = vpop.eup %334 }
  0x47   : > { %v166_v4 = vadd.f32 1.0, %v335_v3 }
  0x49   : > { %336 = vrcp.f32 %v166_v4 }
  0x53   : > { %v337_v5 = vpop.eup %336 }
  0x54   : > { %173 = vperm.xlu0 %333, %v337_v5  }
  0xd3   : > { %v174_v8 = vpop.permute.xlu0 %173 }
  0xd4   : > { %v176_v9 = vmul.f32 %v174_v8, %v169_v6  ;;  %v177_v10 = vmul.f32 %v174_v8, %v170_v7 }
  0xd6   : > { %178 = vst [vmem:[%s159_s5] sm:$0xff] %v176_v9  ;;  %180 = vst.msk [vmem:[%s159_s5 + $0x8] sm:$0xff] %vm179_vm0, %v177_v10 }
  0xd7   : > { %381 = shalt.err (!%p378_p3)
}
  0xd8   : > { %s382_s24 = scalar_lea.hbm %s574_s14, 256  ;;  %s386_s27 = scalar_lea.hbm %s619_s2, 1024 }
  0xd9   : > { %p383_p5 = scmp.ne.s32.totalorder %s574_s14, %s382_s24  ;;  %p387_p13 = scmp.lt.u32.totalorder %s574_s14, %s619_s2 }
  0xda   : > { %p388_p0 = scmp.lt.u32.totalorder %s386_s27, %s382_s24  ;;  %p390_p6 = scmp.lt.u32.totalorder %s382_s24, %s574_s14 }
  0xdb   : > { %p384_p7 = pnand %p383_p5, %p628_p10 }
  0xdc   : > { %p389_p2 = por %p388_p0, %p387_p13 }
  0xdd   : > { %p385_p8 = pneg %p384_p7 }
  0xde   : > { %p391_p11 = por %p390_p6, %p389_p2 }
  0xe0   : > { %p392_p12 = pnand %p391_p11, %p385_p8 }
  0xe2   : > { %395 = shalt.err (!%p392_p12)
}
  0xe3   : > { %288 = dma.vmem_to_hbm [thread:$0]  (%p628_p10), %s576_s6, 256, %s574_s14, %s182_s16  }
  0xe4 PF: > { %p299_p4 = scmp.ge.s32.totalorder %s434_s12, 2  ;;  %s208_s30 = sand.u32 1, %s422_s9  }
  0xe5   : > { %p629_p9 = scmp.ne.s32.totalorder %s624_s22, 0  ;;  %s209_s3 = scalar_lea.sflag [#allocation4], %s208_s30 }
  0xe7   : > { %p295_p1 = pnand %p299_p4, %p629_p9 }
  0xe9   : > { %417 = dma.done.wait (!%p295_p1), %s209_s3, 256  }
  0xea   : > { %419 = vsyncadd (!%p295_p1), %s209_s3, 4294967040  ;;  %p15_p3 = scmp.ge.s32.totalorder %s479_s15, 6   ;;  %s630_s9 = smov %s426_s10 }
  0xeb   : > { %s631_s10 = smov %s430_s11  ;;  %s632_s11 = smov %s491_s18 }
  0xec   : > { %s633_s12 = smov %s479_s15  ;;  %17 = sbr.rel (!%p15_p3) target bundleno = 5 (0x5), region = 74 }
  0xf3   :  { %214 = vsyncpa [#allocation3], 1 }
  0xf4   :  { %216 = vsyncpa [#allocation3 + $0x1], 1 }
  0xf5   :  { %217 = vsyncpa [#allocation4], 1 }
  0xf6   :  { %219 = vsyncpa [#allocation4 + $0x1], 1 }

</bundles_post_ra>
